<compile_context>
chip_gen: v6e
topology: v6e:2x2x1
jax: 0.10.0
libtpu: 0.0.40
codegen_flags: <defaults>
</compile_context>

<pallas_src>
import functools

import jax
import jax.numpy as jnp
from jax.experimental import pallas as pl
from jax.experimental.pallas import tpu as pltpu


def dnn_kernel(x_ref, w1_ref, b1_ref, w2_ref, b2_ref, w3_ref, b3_ref,
               w4t_ref, b4_ref, o_ref, *, compute_dtype):
    # x tile arrives in natural [TB, num_inputs] layout; cast for the MXU.
    x = x_ref[...].astype(compute_dtype)

    # fc1 + relu: contract the feature dim of BOTH operands -> [32, TB]
    # (batch lands on the lane axis; dropout = identity at inference).
    h = jax.lax.dot_general(
        w1_ref[...], x, (((1,), (1,)), ((), ())),
        preferred_element_type=jnp.float32) + b1_ref[...]
    h = jnp.maximum(h, 0.0)

    # fc2 + relu -> [16, TB]
    h = jnp.dot(w2_ref[...], h.astype(compute_dtype),
                preferred_element_type=jnp.float32) + b2_ref[...]
    h = jnp.maximum(h, 0.0)

    # fc3 + relu -> [8, TB]
    h = jnp.dot(w3_ref[...], h.astype(compute_dtype),
                preferred_element_type=jnp.float32) + b3_ref[...]
    h = jnp.maximum(h, 0.0)

    # fc4 -> [n_out, TB]: tiny output width, so use the VPU (broadcast MAC +
    # sublane reduce) when n_out == 1 instead of an MXU pass.
    w4t = w4t_ref[...]                      # [8, n_out]
    n_out = w4t.shape[1]                    # static Python int at trace time
    if n_out == 1:
        logits = jnp.sum(w4t.astype(jnp.float32) * h, axis=0,
                         keepdims=True) + b4_ref[...]
    else:
        logits = jax.lax.dot_general(
            w4t.astype(compute_dtype), h.astype(compute_dtype),
            (((0,), (0,)), ((), ())),
            preferred_element_type=jnp.float32) + b4_ref[...]

    # sigmoid + lane-dense store ([n_out, TB], full 128-lane vst).
    o_ref[...] = jax.nn.sigmoid(logits)


def dnn_forward(x, params, *, tb=8192, compute_dtype=jnp.bfloat16):
    """x: [B, num_inputs].

    params: dict with w{k}: [out, in] (PyTorch layout) and b{k}: [out, 1].
    Returns [B, n_out] float32 (same as nn.Linear convention).
    """
    B, num_inputs = x.shape
    n_out = params["w4"].shape[0]

    # Batch tile: big enough to amortize grid-step overhead and approach the
    # HBM roofline, small enough that the grid has >= 2 steps whenever B
    # allows it (v7x megacore + pipeline overlap).  Multiple of 128 so the
    # lane-dense output block is legal.
    tb = min(tb, max(128, pl.cdiv(B, 2 * 128) * 128))
    b_pad = pl.cdiv(B, tb) * tb
    grid = (b_pad // tb,)

    # Pad only the batch axis (contiguous rows; no transpose, no extra pass
    # when B is already a multiple of tb).  Padded rows are sliced off below.
    if b_pad != B:
        x = jnp.pad(x, ((0, b_pad - B), (0, 0)))

    # Tiny weights: cast once to the compute dtype; biases stay f32.
    w1 = params["w1"].astype(compute_dtype)            # [32, num_inputs]
    w2 = params["w2"].astype(compute_dtype)            # [16, 32]
    w3 = params["w3"].astype(compute_dtype)            # [8, 16]
    w4t = params["w4"].T.astype(compute_dtype)         # [8, n_out] (pre-transposed)
    b1, b2, b3, b4 = (params["b1"], params["b2"], params["b3"], params["b4"])

    def resident(a):
        # Whole (tiny) weight/bias stays VMEM-resident across all grid steps.
        return pl.BlockSpec(a.shape, lambda i: (0, 0))

    layer_dims = [(num_inputs, 32), (32, 16), (16, 8), (8, n_out)]
    flops = 2 * b_pad * sum(fi * fo for fi, fo in layer_dims)
    weight_bytes = sum(int(a.size) * a.dtype.itemsize
                       for a in (w1, w2, w3, w4t, b1, b2, b3, b4))
    cost = pl.CostEstimate(
        flops=flops,
        transcendentals=2 * b_pad * n_out,     # sigmoid ~ exp + recip
        bytes_accessed=(b_pad * num_inputs * x.dtype.itemsize
                        + 4 * b_pad * n_out + weight_bytes),
    )

    out_t = pl.pallas_call(
        functools.partial(dnn_kernel, compute_dtype=compute_dtype),
        out_shape=jax.ShapeDtypeStruct((n_out, b_pad), jnp.float32),
        grid=grid,
        in_specs=[
            # x: batch-tiled in natural layout; each block is a contiguous
            # HBM chunk of tb rows.
            pl.BlockSpec((tb, num_inputs), lambda i: (i, 0)),
            resident(w1), resident(b1),
            resident(w2), resident(b2),
            resident(w3), resident(b3),
            resident(w4t), resident(b4),
        ],
        out_specs=pl.BlockSpec((n_out, tb), lambda i: (0, i)),   # lane-dense
        compiler_params=pltpu.CompilerParams(
            dimension_semantics=("parallel",),
            vmem_limit_bytes=32 * 1024 * 1024,
        ),
        cost_estimate=cost,
    )(x, w1, b1, w2, b2, w3, b3, w4t, b4)

    # Back to [B, n_out] (drop padded batch rows); trivial 4B/row transpose.
    return out_t.T[:B]


def init_params(key, num_inputs=30, n_outputs=1):
    """Deterministic init mimicking nn.Linear's U(-1/sqrt(fan_in), 1/sqrt(fan_in)).

    Weights stored PyTorch-style [out, in]; biases as [out, 1] so they
    broadcast over the lane (batch) axis inside the kernel.
    """
    dims = [num_inputs, 32, 16, 8, n_outputs]
    params = {}
    for i in range(4):
        fan_in, fan_out = dims[i], dims[i + 1]
        key, kw, kb = jax.random.split(key, 3)
        bound = 1.0 / jnp.sqrt(fan_in)
        params[f"w{i+1}"] = jax.random.uniform(
            kw, (fan_out, fan_in), jnp.float32, -bound, bound)
        params[f"b{i+1}"] = jax.random.uniform(
            kb, (fan_out, 1), jnp.float32, -bound, bound)
    return params


def dnn_reference(x, params):
    h = jnp.maximum(x @ params["w1"].T + params["b1"].T, 0.0)
    h = jnp.maximum(h @ params["w2"].T + params["b2"].T, 0.0)
    h = jnp.maximum(h @ params["w3"].T + params["b3"].T, 0.0)
    return jax.nn.sigmoid(h @ params["w4"].T + params["b4"].T)


if __name__ == "__main__":
    key = jax.random.PRNGKey(0)
    key, kx1, kx2 = jax.random.split(key, 3)
    B, NUM_INPUTS, N_OUTPUTS = 8, 30, 1
    params = init_params(key, NUM_INPUTS, N_OUTPUTS)

    # Small batch (single grid step).
    x = jax.random.normal(kx1, (B, NUM_INPUTS), jnp.float32)
    out = jax.block_until_ready(dnn_forward(x, params))
    ref = dnn_reference(x, params)
    assert out.shape == (B, N_OUTPUTS), out.shape
    assert jnp.allclose(out, ref, atol=2e-2), \
        f"max err {jnp.max(jnp.abs(out - ref))}"

    # Batch that exercises a multi-step grid (grid=2) plus batch padding.
    B2 = 300
    x2 = jax.random.normal(kx2, (B2, NUM_INPUTS), jnp.float32)
    out2 = jax.block_until_ready(dnn_forward(x2, params))
    ref2 = dnn_reference(x2, params)
    assert out2.shape == (B2, N_OUTPUTS), out2.shape
    assert jnp.allclose(out2, ref2, atol=2e-2), \
        f"max err {jnp.max(jnp.abs(out2 - ref2))}"

    print("KERNEL_OK")
</pallas_src>

<mosaic_0001>
module attributes {stable_mosaic.version = 11 : i64} {
  func.func @dnn_kernel(%arg0: i32, %arg1: memref<128x30xf32, #tpu.memory_space<vmem>>, %arg2: memref<32x30xbf16, #tpu.memory_space<vmem>>, %arg3: memref<32x1xf32, #tpu.memory_space<vmem>>, %arg4: memref<16x32xbf16, #tpu.memory_space<vmem>>, %arg5: memref<16x1xf32, #tpu.memory_space<vmem>>, %arg6: memref<8x16xbf16, #tpu.memory_space<vmem>>, %arg7: memref<8x1xf32, #tpu.memory_space<vmem>>, %arg8: memref<8x1xbf16, #tpu.memory_space<vmem>>, %arg9: memref<1x1xf32, #tpu.memory_space<vmem>>, %arg10: memref<1x128xf32, #tpu.memory_space<vmem>>) attributes {dimension_semantics = [#tpu.dimension_semantics<parallel>], iteration_bounds = array<i64: 1>, scalar_prefetch = 0 : i64, scratch_operands = 0 : i64, tpu.core_type = #tpu.core_type<tc>, window_params = [{transform_indices = @transform_0, window_bounds = array<i64: 128, 30>}, {pipeline_mode = #tpu.pipeline_mode<synchronous>, transform_indices = @transform_1, window_bounds = array<i64: 32, 30>}, {pipeline_mode = #tpu.pipeline_mode<synchronous>, transform_indices = @transform_2, window_bounds = array<i64: 32, 1>}, {pipeline_mode = #tpu.pipeline_mode<synchronous>, transform_indices = @transform_3, window_bounds = array<i64: 16, 32>}, {pipeline_mode = #tpu.pipeline_mode<synchronous>, transform_indices = @transform_4, window_bounds = array<i64: 16, 1>}, {pipeline_mode = #tpu.pipeline_mode<synchronous>, transform_indices = @transform_5, window_bounds = array<i64: 8, 16>}, {pipeline_mode = #tpu.pipeline_mode<synchronous>, transform_indices = @transform_6, window_bounds = array<i64: 8, 1>}, {pipeline_mode = #tpu.pipeline_mode<synchronous>, transform_indices = @transform_7, window_bounds = array<i64: 8, 1>}, {pipeline_mode = #tpu.pipeline_mode<synchronous>, transform_indices = @transform_8, window_bounds = array<i64: 1, 1>}, {transform_indices = @transform_9, window_bounds = array<i64: 1, 128>}]} {
    %c0 = arith.constant 0 : index
    %c0_0 = arith.constant 0 : index
    %0 = vector.load %arg1[%c0, %c0_0] : memref<128x30xf32, #tpu.memory_space<vmem>>, vector<128x30xf32>
    %1 = arith.truncf %0 : vector<128x30xf32> to vector<128x30xbf16>
    %c0_1 = arith.constant 0 : index
    %c0_2 = arith.constant 0 : index
    %2 = vector.load %arg2[%c0_1, %c0_2] : memref<32x30xbf16, #tpu.memory_space<vmem>>, vector<32x30xbf16>
    %cst = arith.constant dense<0.000000e+00> : vector<32x128xf32>
    %3 = tpu.matmul %2, %1, %cst {dimension_numbers = #tpu.dot_dimension_numbers<[1], [1], [0], [0], [0, 0, 1, 0], [], []>} : vector<32x30xbf16>, vector<128x30xbf16>, vector<32x128xf32> -> vector<32x128xf32>
    %c0_3 = arith.constant 0 : index
    %c0_4 = arith.constant 0 : index
    %4 = vector.load %arg3[%c0_3, %c0_4] : memref<32x1xf32, #tpu.memory_space<vmem>>, vector<32x1xf32>
    %5 = vector.broadcast %4 : vector<32x1xf32> to vector<32x128xf32>
    %6 = arith.addf %3, %5 : vector<32x128xf32>
    %cst_5 = arith.constant 0.000000e+00 : f32
    %7 = vector.broadcast %cst_5 : f32 to vector<32x128xf32>
    %8 = arith.maximumf %6, %7 : vector<32x128xf32>
    %c0_6 = arith.constant 0 : index
    %c0_7 = arith.constant 0 : index
    %9 = vector.load %arg4[%c0_6, %c0_7] : memref<16x32xbf16, #tpu.memory_space<vmem>>, vector<16x32xbf16>
    %10 = arith.truncf %8 : vector<32x128xf32> to vector<32x128xbf16>
    %cst_8 = arith.constant dense<0.000000e+00> : vector<16x128xf32>
    %11 = tpu.matmul %9, %10, %cst_8 {dimension_numbers = #tpu.dot_dimension_numbers<[1], [0], [0], [1], [0, 0, 1, 1], [], []>} : vector<16x32xbf16>, vector<32x128xbf16>, vector<16x128xf32> -> vector<16x128xf32>
    %c0_9 = arith.constant 0 : index
    %c0_10 = arith.constant 0 : index
    %12 = vector.load %arg5[%c0_9, %c0_10] : memref<16x1xf32, #tpu.memory_space<vmem>>, vector<16x1xf32>
    %13 = vector.broadcast %12 : vector<16x1xf32> to vector<16x128xf32>
    %14 = arith.addf %11, %13 : vector<16x128xf32>
    %cst_11 = arith.constant 0.000000e+00 : f32
    %15 = vector.broadcast %cst_11 : f32 to vector<16x128xf32>
    %16 = arith.maximumf %14, %15 : vector<16x128xf32>
    %c0_12 = arith.constant 0 : index
    %c0_13 = arith.constant 0 : index
    %17 = vector.load %arg6[%c0_12, %c0_13] : memref<8x16xbf16, #tpu.memory_space<vmem>>, vector<8x16xbf16>
    %18 = arith.truncf %16 : vector<16x128xf32> to vector<16x128xbf16>
    %cst_14 = arith.constant dense<0.000000e+00> : vector<8x128xf32>
    %19 = tpu.matmul %17, %18, %cst_14 {dimension_numbers = #tpu.dot_dimension_numbers<[1], [0], [0], [1], [0, 0, 1, 1], [], []>} : vector<8x16xbf16>, vector<16x128xbf16>, vector<8x128xf32> -> vector<8x128xf32>
    %c0_15 = arith.constant 0 : index
    %c0_16 = arith.constant 0 : index
    %20 = vector.load %arg7[%c0_15, %c0_16] : memref<8x1xf32, #tpu.memory_space<vmem>>, vector<8x1xf32>
    %21 = vector.broadcast %20 : vector<8x1xf32> to vector<8x128xf32>
    %22 = arith.addf %19, %21 : vector<8x128xf32>
    %cst_17 = arith.constant 0.000000e+00 : f32
    %23 = vector.broadcast %cst_17 : f32 to vector<8x128xf32>
    %24 = arith.maximumf %22, %23 : vector<8x128xf32>
    %c0_18 = arith.constant 0 : index
    %c0_19 = arith.constant 0 : index
    %25 = vector.load %arg8[%c0_18, %c0_19] : memref<8x1xbf16, #tpu.memory_space<vmem>>, vector<8x1xbf16>
    %26 = arith.extf %25 : vector<8x1xbf16> to vector<8x1xf32>
    %27 = vector.broadcast %26 : vector<8x1xf32> to vector<8x128xf32>
    %28 = arith.mulf %27, %24 : vector<8x128xf32>
    %cst_20 = arith.constant dense<0.000000e+00> : vector<128xf32>
    %29 = vector.multi_reduction <add>, %28, %cst_20 [0] : vector<8x128xf32> to vector<128xf32>
    %30 = vector.shape_cast %29 : vector<128xf32> to vector<1x128xf32>
    %c0_21 = arith.constant 0 : index
    %c0_22 = arith.constant 0 : index
    %31 = vector.load %arg9[%c0_21, %c0_22] : memref<1x1xf32, #tpu.memory_space<vmem>>, vector<1x1xf32>
    %32 = vector.broadcast %31 : vector<1x1xf32> to vector<1x128xf32>
    %33 = arith.addf %30, %32 : vector<1x128xf32>
    %34 = arith.negf %33 : vector<1x128xf32>
    %35 = math.exp %34 : vector<1x128xf32>
    %cst_23 = arith.constant 1.000000e+00 : f32
    %36 = vector.broadcast %cst_23 : f32 to vector<1x128xf32>
    %37 = arith.addf %36, %35 : vector<1x128xf32>
    %38 = arith.divf %36, %37 : vector<1x128xf32>
    %c0_24 = arith.constant 0 : index
    %c0_25 = arith.constant 0 : index
    %39 = vector.load %arg10[%c0_24, %c0_25] : memref<1x128xf32, #tpu.memory_space<vmem>>, vector<1x128xf32>
    tpu.vector_store %arg10[%c0_24, %c0_25], %38 {strides = array<i32>} : memref<1x128xf32, #tpu.memory_space<vmem>>, vector<1x128xf32>,
    return
  }
  func.func @transform_0(%arg0: i32) -> (i32, i32) {
    %c0_i32 = arith.constant 0 : i32
    %c0_i32_0 = arith.constant 0 : i32
    return %arg0, %c0_i32 : i32, i32
  }
  func.func @transform_1(%arg0: i32) -> (i32, i32) {
    %c0_i32 = arith.constant 0 : i32
    %c0_i32_0 = arith.constant 0 : i32
    %c0_i32_1 = arith.constant 0 : i32
    return %c0_i32, %c0_i32_0 : i32, i32
  }
  func.func @transform_2(%arg0: i32) -> (i32, i32) {
    %c0_i32 = arith.constant 0 : i32
    %c0_i32_0 = arith.constant 0 : i32
    %c0_i32_1 = arith.constant 0 : i32
    return %c0_i32, %c0_i32_0 : i32, i32
  }
  func.func @transform_3(%arg0: i32) -> (i32, i32) {
    %c0_i32 = arith.constant 0 : i32
    %c0_i32_0 = arith.constant 0 : i32
    %c0_i32_1 = arith.constant 0 : i32
    return %c0_i32, %c0_i32_0 : i32, i32
  }
  func.func @transform_4(%arg0: i32) -> (i32, i32) {
    %c0_i32 = arith.constant 0 : i32
    %c0_i32_0 = arith.constant 0 : i32
    %c0_i32_1 = arith.constant 0 : i32
    return %c0_i32, %c0_i32_0 : i32, i32
  }
  func.func @transform_5(%arg0: i32) -> (i32, i32) {
    %c0_i32 = arith.constant 0 : i32
    %c0_i32_0 = arith.constant 0 : i32
    %c0_i32_1 = arith.constant 0 : i32
    return %c0_i32, %c0_i32_0 : i32, i32
  }
  func.func @transform_6(%arg0: i32) -> (i32, i32) {
    %c0_i32 = arith.constant 0 : i32
    %c0_i32_0 = arith.constant 0 : i32
    %c0_i32_1 = arith.constant 0 : i32
    return %c0_i32, %c0_i32_0 : i32, i32
  }
  func.func @transform_7(%arg0: i32) -> (i32, i32) {
    %c0_i32 = arith.constant 0 : i32
    %c0_i32_0 = arith.constant 0 : i32
    %c0_i32_1 = arith.constant 0 : i32
    return %c0_i32, %c0_i32_0 : i32, i32
  }
  func.func @transform_8(%arg0: i32) -> (i32, i32) {
    %c0_i32 = arith.constant 0 : i32
    %c0_i32_0 = arith.constant 0 : i32
    %c0_i32_1 = arith.constant 0 : i32
    return %c0_i32, %c0_i32_0 : i32, i32
  }
  func.func @transform_9(%arg0: i32) -> (i32, i32) {
    %c0_i32 = arith.constant 0 : i32
    %c0_i32_0 = arith.constant 0 : i32
    return %c0_i32, %arg0 : i32, i32
  }
}

</mosaic_0001>

<bundles_post_ra>
// kernel: tpu_custom_call.1
= control target key start
LH: loop header
LB: loop body
LE: loop exit
PB: predicated region body
PF: predicated region fallthrough
CT: control target
= control target key end

     0   :  { %s613_s0 = inlined_call_operand.vmem [shape: f32[128,30], index: 0, kind: input, shape index: {}]   ;;  %s614_s1 = inlined_call_operand.vmem [shape: bf16[32,30], index: 1, kind: input, shape index: {}]   ;;  %s615_s2 = inlined_call_operand.vmem [shape: f32[32,1], index: 2, kind: input, shape index: {}]   ;;  %s616_s3 = inlined_call_operand.vmem [shape: bf16[16,32], index: 3, kind: input, shape index: {}]   ;;  %s617_s4 = inlined_call_operand.vmem [shape: f32[16,1], index: 4, kind: input, shape index: {}]   ;;  %s618_s5 = inlined_call_operand.vmem [shape: bf16[8,16], index: 5, kind: input, shape index: {}]   ;;  %s619_s6 = inlined_call_operand.vmem [shape: f32[8,1], index: 6, kind: input, shape index: {}]   ;;  %s620_s7 = inlined_call_operand.vmem [shape: bf16[8,1], index: 7, kind: input, shape index: {}]   ;;  %s621_s8 = inlined_call_operand.<no memory space> [shape: f32[1,1], index: 8, kind: input, shape index: {}]   ;;  %s622_s9 = inlined_call_operand.hbm [shape: f32[1,128], index: 9, kind: output, shape index: {}]  }
   0x1   :  { %v14_v0 = vstv %s621_s8 }
   0x2   :  { %15 = vst [vmem:[#allocation2] sm:$0x1] %v14_v0 }
   0x3   :  { %v50_v1 = vld [vmem:[%s613_s0 + $0x70] sm:$0xff]  ;;  %v51_v2 = vld [vmem:[%s613_s0 + $0x78] sm:$0xff]  ;;  %vm98_vm0 = vcmask 244736   ;;  %v48_v3 = vld [vmem:[%s613_s0 + $0x60] sm:$0xff]  ;;  %v449_v6 = vmov 0  }
   0x4   :  { %v59_v4 = vpack.c.bf16 %v51_v2, %v50_v1  ;;  %v49_v5 = vld [vmem:[%s613_s0 + $0x68] sm:$0xff]  ;;  %418 = vset.pattern.permute.xlu0 %v449_v6  ;;  %419 = vset.pattern.permute.xlu1 %v449_v6  ;;  %v46_v9 = vld [vmem:[%s613_s0 + $0x50] sm:$0xff]  ;;  %v47_v10 = vld [vmem:[%s613_s0 + $0x58] sm:$0xff] }
   0x5   :  { %v58_v7 = vpack.c.bf16 %v49_v5, %v48_v3  ;;  %v420_v11 = vld [vmem:[%s614_s1] sm:$0xff]   ;;  %v66_v12 = vld [vmem:[%s615_s2 + $0x10] sm:$0xff]  ;;  %v57_v15 = vpack.c.bf16 %v47_v10, %v46_v9  ;;  %v67_v16 = vld [vmem:[%s615_s2 + $0x18] sm:$0xff] }
   0x6   :  { %406 = vmatprep.subr.msk.bf16.mxu0 %vm98_vm0, %v59_v4  ;;  %v127_v8 = vsel %vm98_vm0, %v59_v4, 0  ;;  %388 = vmatprep.mubr.msk.bf16.mxu0 %vm98_vm0, %v420_v11  ;;  %v64_v13 = vld [vmem:[%s615_s2] sm:$0xff]  ;;  %v65_v17 = vld [vmem:[%s615_s2 + $0x8] sm:$0xff] }
   0x7   :  { %373 = vmatpush3.bf16.xpose.msra.mxu0 %v127_v8  ;;  %80 = vperm.xlu0 %418, %v66_v12   ;;  %v124_v14 = vsel %vm98_vm0, %v58_v7, 0 }
   0x8   :  { %407 = vmatprep.subr.msk.bf16.mxu0 %vm98_vm0, %v58_v7  ;;  %70 = vperm.xlu1 %419, %v64_v13  }
   0x9   :  { %16 = vsyncpa [#allocation4], 0  ;;  %v44_v18 = vld [vmem:[%s613_s0 + $0x40] sm:$0xff]  ;;  %v45_v20 = vld [vmem:[%s613_s0 + $0x48] sm:$0xff]  ;;  %v121_v23 = vsel %vm98_vm0, %v57_v15, 0  ;;  %v450_v46 = vmov 0.0  }
   0xa   :  { %v186_v19 = vld [vmem:[%s617_s4] sm:$0xff]  ;;  %v187_v21 = vld [vmem:[%s617_s4 + $0x8] sm:$0xff]  ;;  %v56_v24 = vpack.c.bf16 %v45_v20, %v44_v18  ;;  %v42_v28 = vld [vmem:[%s613_s0 + $0x30] sm:$0xff]  ;;  %392 = vmatprep.subr.bf16.mxu1 %v450_v46  ;;  %vm451_vm1 = vmmov 0   ;;  %vm203_vm2 = vcmask 261120   ;;  %vm258_vm3 = vcmask 130048  }
   0xb   :  { %85 = vperm.xlu0 %418, %v67_v16   ;;  %v303_v22 = vld [vmem:[%s620_s7] sm:$0xf]  ;;  %v43_v29 = vld [vmem:[%s613_s0 + $0x38] sm:$0xff]  ;;  %v41_v33 = vld [vmem:[%s613_s0 + $0x28] sm:$0xff]  ;;  %396 = vmatprep.mubr.msk.bf16.mxu1 %vm451_vm1, %v450_v46 }
   0xc   :  { %75 = vperm.xlu1 %419, %v65_v17   ;;  %v252_v25 = vld [vmem:[%s619_s6] sm:$0xff]  ;;  %v304_v26 = vunpack.c.l.bf16 %v303_v22  ;;  %v118_v30 = vsel %vm98_vm0, %v56_v24, 0  ;;  %v55_v31 = vpack.c.bf16 %v43_v29, %v42_v28  ;;  %v38_v36 = vld [vmem:[%s613_s0 + $0x10] sm:$0xff]  ;;  %v39_v37 = vld [vmem:[%s613_s0 + $0x18] sm:$0xff] }
   0xd   :  { %v317_v27 = vld [vmem:[#allocation2] sm:$0x1]  ;;  %v53_v39 = vpack.c.bf16 %v39_v37, %v38_v36  ;;  %v37_v41 = vld [vmem:[%s613_s0 + $0x8] sm:$0xff] }
   0xe   :  { %v40_v32 = vld [vmem:[%s613_s0 + $0x20] sm:$0xff]  ;;  %v115_v34 = vsel %vm98_vm0, %v55_v31, 0  ;;  %v421_v45 = vld [vmem:[%s614_s1 + $0x8] sm:$0xff]  }
   0xf   :  { %375 = vmatpush3.bf16.xpose.msra.mxu0 %v124_v14  ;;  %190 = vperm.xlu0 %418, %v186_v19   ;;  %v54_v35 = vpack.c.bf16 %v41_v33, %v40_v32  ;;  %v36_v40 = vld [vmem:[%s613_s0] sm:$0xff]  ;;  %v109_v42 = vsel %vm98_vm0, %v53_v39, 0 }
  0x10   :  { %408 = vmatprep.subr.msk.bf16.mxu0 %vm98_vm0, %v57_v15  ;;  %195 = vperm.xlu1 %419, %v187_v21   ;;  %v52_v43 = vpack.c.bf16 %v37_v41, %v36_v40  ;;  %v422_v1 = vld [vmem:[%s616_s3] sm:$0xff]   ;;  %v323_v21 = vlaneseq }
  0x11   :  { %v112_v38 = vsel %vm98_vm0, %v54_v35, 0  ;;  %v250_v13 = vld [vmem:[%s618_s5] sm:$0xf]  ;;  %s452_s5 = smov [#allocation3]  }
  0x12   :  { %v106_v44 = vsel %vm98_vm0, %v52_v43, 0  ;;  %s341_s16 = sshll.u32 %s452_s5, 4  ;;  %s342_s16 = int_to_ptr.vmem [resolvable:$true] %s341_s16 }
  0x13   :  { %255 = vperm.xlu0 %418, %v252_v25   ;;  %v324_v25 = vshrl.u32 %v323_v21, 7  ;;  %s427_s17 = scalar_lea.vmem %s342_s16, 16  ;;  %s431_s2 = scalar_lea.vmem %s342_s16, 32 }
  0x14   :  { %307 = vperm.xlu1 %419, %v304_v26   ;;  %p428_p0 = scmp.ne.s32.totalorder %s342_s16, %s427_s17  ;;  %p432_p1 = scmp.lt.s32.totalorder %s342_s16, %s342_s16 }
  0x15   :  { %v325_v28 = vsub.s32 0, %v324_v25  ;;  %p433_p2 = scmp.lt.s32.totalorder %s431_s2, %s427_s17 }
  0x17   :  { %377 = vmatpush3.bf16.xpose.msra.mxu0 %v121_v23  ;;  %320 = vperm.xlu0 %418, %v317_v27   ;;  %p434_p3 = por %p433_p2, %p432_p1 }
  0x18   :  { %409 = vmatprep.subr.msk.bf16.mxu0 %vm98_vm0, %v56_v24 }
  0x19   :  { %p435_p4 = pnand %p434_p3, %p428_p0 }
  0x1f   :  { %379 = vmatpush3.bf16.xpose.msra.mxu0 %v118_v30 }
  0x20   :  { %410 = vmatprep.subr.msk.bf16.mxu0 %vm98_vm0, %v55_v31 }
  0x27   :  { %381 = vmatpush3.bf16.xpose.msra.mxu0 %v115_v34 }
  0x28   :  { %411 = vmatprep.subr.msk.bf16.mxu0 %vm98_vm0, %v54_v35 }
  0x2f   :  { %383 = vmatpush3.bf16.xpose.msra.mxu0 %v112_v38 }
  0x30   :  { %412 = vmatprep.subr.msk.bf16.mxu0 %vm98_vm0, %v53_v39 }
  0x37   :  { %385 = vmatpush3.bf16.xpose.msra.mxu0 %v109_v42 }
  0x38   :  { %413 = vmatprep.subr.msk.bf16.mxu0 %vm98_vm0, %v52_v43 }
  0x3f   :  { %387 = vmatpush3.bf16.xpose.msra.mxu0 %v106_v44 }
  0x46   :  { %389 = vmatmul.mubr.msk.bf16.vlgmr.msra.gmra.mxu0 %vm98_vm0, %v421_v45 }
  0x82   :  { %v81_v47 = vpop.permute.xlu0 %80 }
  0x83   :  { %v71_v48 = vpop.permute.xlu1 %70 }
  0x86   :  { %v86_v52 = vpop.permute.xlu0 %85 }
  0x87   :  { %v76_v55 = vpop.permute.xlu1 %75 }
  0x8a   :  { %v191_v3 = vpop.permute.xlu0 %190 }
  0x8b   :  { %v196_v6 = vpop.permute.xlu1 %195 }
  0x8e   :  { %v256_v14 = vpop.permute.xlu0 %255 }
  0x8f   :  { %v308_v19 = vpop.permute.xlu1 %307 }
  0x92   :  { %v321_v30 = vpop.permute.xlu0 %320 }
  0x93   :  { %v326_v32 = vrot.slane %v321_v30, %v325_v28 }
 0x106   :  { %v390_v49 = vpop.f32.mrf.mxu0 }
 0x107   :  { %v172_v51 = vadd.f32 %v390_v49, %v81_v47 }
 0x108   :  { %v163_v50 = vpop.f32.mrf.mxu0 }
 0x109   :  { %v180_v57 = vmax.f32 %v172_v51, 0.0  ;;  %v164_v58 = vadd.f32 %v163_v50, %v71_v48 }
 0x10a   :  { %v391_v53 = vpop.f32.mrf.mxu0 }
 0x10b   :  { %v175_v54 = vadd.f32 %v391_v53, %v86_v52  ;;  %v178_v63 = vmax.f32 %v164_v58, 0.0 }
 0x10c   :  { %v166_v56 = vpop.f32.mrf.mxu0 }
 0x10d   :  { %v181_v59 = vmax.f32 %v175_v54, 0.0  ;;  %v167_v60 = vadd.f32 %v166_v56, %v76_v55 }
 0x10f   :  { %v179_v61 = vmax.f32 %v167_v60, 0.0  ;;  %v185_v62 = vpack.c.bf16 %v181_v59, %v180_v57 }
 0x111   :  { %393 = vmatpush3.bf16.msra.mxu1 %v185_v62  ;;  %v184_v0 = vpack.c.bf16 %v179_v61, %v178_v63 }
 0x112   :  { %394 = vmatprep.subr.bf16.mxu1 %v450_v46 }
 0x115   :  { %395 = vmatpush3.bf16.msra.mxu1 %v184_v0 }
 0x116   :  { %400 = vmatprep.subr.bf16.mxu1 %v450_v46 }
 0x118   :  { %397 = vmatmul.mubr.msk.bf16.vlgmr.msra.gmra.mxu1 %vm203_vm2, %v422_v1 }
 0x119   :  { %402 = vmatprep.mubr.msk.bf16.mxu1 %vm451_vm1, %v450_v46 }
 0x1d8   :  { %v241_v2 = vpop.f32.mrf.mxu1 }
 0x1d9   :  { %v242_v5 = vadd.f32 %v241_v2, %v191_v3 }
 0x1da   :  { %v398_v4 = vpop.f32.mrf.mxu1 }
 0x1db   :  { %v248_v10 = vmax.f32 %v242_v5, 0.0 }
 0x1dc   :  { %v244_v7 = vpop.f32.mrf.mxu1 }
 0x1dd   :  { %v245_v8 = vadd.f32 %v244_v7, %v196_v6 }
 0x1de   :  { %v399_v9 = vpop.f32.mrf.mxu1 }
 0x1df   :  { %v249_v11 = vmax.f32 %v245_v8, 0.0 }
 0x1e1   :  { %v251_v12 = vpack.c.bf16 %v249_v11, %v248_v10 }
 0x1e3   :  { %401 = vmatpush3.bf16.msra.mxu1 %v251_v12 }
 0x1e6   :  { %403 = vmatmul.mubr.msk.bf16.vlgmr.msra.gmra.mxu1 %vm258_vm3, %v250_v13 }
 0x2a6   :  { %v296_v15 = vpop.f32.mrf.mxu1 }
 0x2a7   :  { %v297_v16 = vadd.f32 %v296_v15, %v256_v14 }
 0x2a8   :  { %v404_v17 = vpop.f32.mrf.mxu1 }
 0x2a9   :  { %v302_v18 = vmax.f32 %v297_v16, 0.0 }
 0x2aa   :  { %v299_v20 = vpop.f32.mrf.mxu1 }
 0x2ab   :  { %v310_v22 = vmul.f32 %v308_v19, %v302_v18 }
 0x2ac   :  { %v405_v23 = vpop.f32.mrf.mxu1 }
 0x2ad   :  { %v311_v24 = vrot.slane %v310_v22, 4 }
 0x2af   :  { %v312_v26 = vadd.f32 %v311_v24, %v310_v22 }
 0x2b1   :  { %v313_v27 = vrot.slane %v312_v26, 2 }
 0x2b3   :  { %v314_v29 = vadd.f32 %v313_v27, %v312_v26 }
 0x2b5   :  { %v315_v31 = vrot.slane %v314_v29, 1 }
 0x2b7   :  { %v316_v33 = vadd.f32 %v315_v31, %v314_v29 }
 0x2b9   :  { %v327_v34 = vadd.f32 %v326_v32, %v316_v33 }
 0x2bb   :  { %v356_v35 = vmul.f32 -1.442695, %v327_v34 }
 0x2bd   :  { %423 = vpow2.f32 %v356_v35 }
 0x2ca   :  { %v424_v36 = vpop.eup %423 }
 0x2cb   :  { %v331_v37 = vadd.f32 1.0, %v424_v36 }
 0x2cd   :  { %425 = vrcp.f32 %v331_v37 }
 0x2da   :  { %v426_v38 = vpop.eup %425 }
 0x2db   :  { %334 = vst [vmem:[#allocation3] sm:$0x1] %v426_v38 }
 0x2dc   :  { %438 = shalt.err (!%p435_p4)
}
 0x2dd   :  { %344 = dma.vmem_to_hbm [thread:$0]  %s342_s16, 16, %s622_s9, [#allocation4]  }
 0x2de   :  { %447 = dma.done.wait [#allocation4], 16  }
 0x2df   :  { %448 = vsyncadd [#allocation4], 4294967280 }
 0x2e0   :  { %348 = vsyncpa [#allocation4], 1 }

</bundles_post_ra>
